<compile_context>
chip_gen: v6e
topology: v6e:2x2x1
jax: 0.10.0
libtpu: 0.0.40
codegen_flags: <defaults>
</compile_context>

<pallas_src>
import jax
import jax.numpy as jnp
from jax import lax
from jax.experimental import pallas as pl
from jax.experimental.pallas import tpu as pltpu


# ----------------------------- Pallas kernel --------------------------------
def _adapter_kernel(x_ref, gamma_ref, beta_ref, pos_ref,
                    w1_ref, b1_ref, w2_ref, b2_ref, tok_ref, o_ref):
    BB, T, D_in = x_ref.shape
    D_out = o_ref.shape[-1]

    x = x_ref[...].astype(jnp.float32)                         # (BB, T, D_in)

    # --- LayerNorm over last dim (eps = 1e-5), one-pass stats ---
    inv_d = 1.0 / D_in
    mean = jnp.sum(x, axis=-1, keepdims=True) * inv_d
    mean_sq = jnp.sum(x * x, axis=-1, keepdims=True) * inv_d
    var = mean_sq - mean * mean
    xn = (x - mean) * lax.rsqrt(var + 1e-5)
    xn = xn * gamma_ref[...] + beta_ref[...]                    # (1, D_in) broadcast

    # --- positional embedding (broadcast over the batch tile) ---
    xn = xn + pos_ref[...]                                      # (T, D_in) broadcast

    # --- Linear1 + exact erf-GELU.  M = BB*T rows on the MXU, bf16 operands,
    #     f32 accumulation. ---
    xn2 = xn.reshape(BB * T, D_in).astype(w1_ref.dtype)
    h = jnp.dot(xn2, w1_ref[...], preferred_element_type=jnp.float32)
    h = h + b1_ref[...]                                         # (BB*T, D_out)
    h = 0.5 * h * (1.0 + lax.erf(h * 0.7071067811865476))

    # --- Linear2 ---
    y = jnp.dot(h.astype(w2_ref.dtype), w2_ref[...],
                preferred_element_type=jnp.float32)
    y = y + b2_ref[...]
    y3 = y.reshape(BB, T, D_out)                                # (BB, T, D_out)

    # --- assemble [tok0, y, tok1] in VMEM; single lane-dense full-block store ---
    tok = tok_ref[...].astype(jnp.float32).reshape(1, 2, D_out)
    tok0 = jnp.broadcast_to(tok[:, 0:1, :], (BB, 1, D_out))
    tok1 = jnp.broadcast_to(tok[:, 1:2, :], (BB, 1, D_out))
    out = jnp.concatenate([tok0, y3, tok1], axis=1)             # (BB, T+2, D_out)
    o_ref[...] = out.astype(o_ref.dtype)


# ------------------------------ call wrapper ---------------------------------
def _pick_batch_tile(B, T, target_rows=256):
    """Largest divisor of B such that BB*T stays near the MXU-friendly row count."""
    bb_cap = max(1, min(B, max(1, target_rows // max(T, 1))))
    for bb in range(bb_cap, 0, -1):
        if B % bb == 0:
            return bb
    return 1


def _vmem_limit_bytes():
    try:
        kind = jax.devices()[0].device_kind.lower()
    except Exception:  # pragma: no cover - defensive fallback
        kind = ""
    if "v5" in kind:
        return 64 << 20       # 128 MiB physical VMEM
    if "v6" in kind:
        return 96 << 20       # 128 MiB physical VMEM
    return 48 << 20           # v7x / unknown: 64 MiB physical -> leave headroom


def adapter_core(x, gamma2, beta2, pos_emb, w1_t, b1_2, w2_t, b2_2, tok01):
    """LN -> +pos -> Linear1 -> GELU -> Linear2 -> [tok0, y, tok1] for x (B, T, D_in)."""
    B, T, D_in = x.shape
    D_out = w1_t.shape[1]
    BB = _pick_batch_tile(B, T)

    def const(*shape):
        return pl.BlockSpec(shape, lambda i: tuple(0 for _ in shape))

    return pl.pallas_call(
        _adapter_kernel,
        out_shape=jax.ShapeDtypeStruct((B, T + 2, D_out), x.dtype),
        grid_spec=pltpu.PrefetchScalarGridSpec(
            num_scalar_prefetch=0,
            grid=(B // BB,),
            in_specs=[
                pl.BlockSpec((BB, T, D_in), lambda i: (i, 0, 0)),   # x
                const(1, D_in),            # gamma
                const(1, D_in),            # beta
                const(T, D_in),            # pos_emb
                const(D_in, D_out),        # W1^T (bf16)
                const(1, D_out),           # b1
                const(D_out, D_out),       # W2^T (bf16)
                const(1, D_out),           # b2
                const(2, D_out),           # other_tokens[0:2]
            ],
            out_specs=pl.BlockSpec((BB, T + 2, D_out), lambda i: (i, 0, 0)),
        ),
        compiler_params=pltpu.CompilerParams(
            dimension_semantics=("parallel",),
            vmem_limit_bytes=_vmem_limit_bytes(),
        ),
    )(x, gamma2, beta2, pos_emb, w1_t, b1_2, w2_t, b2_2, tok01)


# ------------------------------ Module wrapper -------------------------------
class ImageAdapterPallas:
    """JAX/Pallas port of ImageAdapter with ln1=True, pos_emb=True, deep_extract=False."""
    # TODO(synk): deep_extract=True path (5-layer feature concat) is not implemented.

    def __init__(self, input_features, output_features, num_image_tokens, key):
        k = jax.random.split(key, 6)
        self.input_features = input_features
        self.output_features = output_features
        # f32 master parameters (shapes match the PyTorch module).
        self.gamma = jnp.ones((input_features,), jnp.float32)          # LayerNorm weight
        self.beta = jnp.zeros((input_features,), jnp.float32)          # LayerNorm bias
        self.pos_emb = 0.02 * jax.random.normal(k[0], (num_image_tokens, input_features), jnp.float32)
        self.w1 = 0.05 * jax.random.normal(k[1], (output_features, input_features), jnp.float32)
        self.b1 = 0.01 * jax.random.normal(k[2], (output_features,), jnp.float32)
        self.w2 = 0.05 * jax.random.normal(k[3], (output_features, output_features), jnp.float32)
        self.b2 = 0.01 * jax.random.normal(k[4], (output_features,), jnp.float32)
        self.other_tokens = 0.02 * jax.random.normal(k[5], (3, output_features), jnp.float32)

        # Kernel-ready caches, built ONCE (not per forward call): pre-transposed
        # bf16 weights, 2-D bias/scale rows, and the two boundary token rows.
        self.w1_t = jnp.asarray(self.w1.T, jnp.bfloat16)
        self.w2_t = jnp.asarray(self.w2.T, jnp.bfloat16)
        self.gamma2 = self.gamma.reshape(1, input_features)
        self.beta2 = self.beta.reshape(1, input_features)
        self.b1_2 = self.b1.reshape(1, output_features)
        self.b2_2 = self.b2.reshape(1, output_features)
        self.tok01 = self.other_tokens[0:2]

    def __call__(self, vision_outputs):
        # vision_outputs: (L, B, T, D_in) stack of hidden states; deep_extract=False
        # path selects layer [-2].  The kernel emits the final (B, T+2, D_out).
        x = vision_outputs[-2]
        return adapter_core(x, self.gamma2, self.beta2, self.pos_emb,
                            self.w1_t, self.b1_2, self.w2_t, self.b2_2, self.tok01)

    def get_eot_embedding(self):
        return self.other_tokens[2]

    # Pure-JAX f32 reference for correctness checking.
    def reference(self, vision_outputs):
        x = vision_outputs[-2]
        mean = jnp.mean(x, axis=-1, keepdims=True)
        var = jnp.mean((x - mean) ** 2, axis=-1, keepdims=True)
        xn = (x - mean) / jnp.sqrt(var + 1e-5) * self.gamma + self.beta
        xn = xn + self.pos_emb
        h = xn @ self.w1.T + self.b1
        h = 0.5 * h * (1.0 + lax.erf(h / jnp.sqrt(2.0)))
        y = h @ self.w2.T + self.b2
        B = x.shape[0]
        tok = jnp.broadcast_to(self.other_tokens[jnp.array([0, 1])],
                               (B, 2, self.output_features))
        return jnp.concatenate([tok[:, 0:1], y, tok[:, 1:2]], axis=1)


# ---------------------------------- main -------------------------------------
if __name__ == "__main__":
    key = jax.random.PRNGKey(0)
    k_in, k_params = jax.random.split(key)

    L, B, T = 4, 2, 8            # layers of vision hidden-states, batch, image tokens
    D_in, D_out = 64, 128        # input_features, output_features

    vision_outputs = jax.random.normal(k_in, (L, B, T, D_in), jnp.float32)

    adapter = ImageAdapterPallas(D_in, D_out, num_image_tokens=T, key=k_params)

    out = adapter(vision_outputs)
    out = jax.block_until_ready(out)

    ref = adapter.reference(vision_outputs)
    assert out.shape == (B, T + 2, D_out), out.shape
    # bf16 matmul operands with f32 accumulation -> compare to the all-f32
    # reference with a correspondingly looser tolerance.
    assert jnp.allclose(out, ref, atol=2e-2, rtol=2e-2), (
        "mismatch vs reference, max abs diff = "
        f"{float(jnp.max(jnp.abs(out - ref)))}")

    _ = jax.block_until_ready(adapter.get_eot_embedding())
    print("KERNEL_OK")
</pallas_src>

<mosaic_0001>
module attributes {stable_mosaic.version = 11 : i64} {
  func.func @_adapter_kernel(%arg0: i32, %arg1: memref<2x8x64xf32, #tpu.memory_space<vmem>>, %arg2: memref<1x64xf32, #tpu.memory_space<vmem>>, %arg3: memref<1x64xf32, #tpu.memory_space<vmem>>, %arg4: memref<8x64xf32, #tpu.memory_space<vmem>>, %arg5: memref<64x128xbf16, #tpu.memory_space<vmem>>, %arg6: memref<1x128xf32, #tpu.memory_space<vmem>>, %arg7: memref<128x128xbf16, #tpu.memory_space<vmem>>, %arg8: memref<1x128xf32, #tpu.memory_space<vmem>>, %arg9: memref<2x128xf32, #tpu.memory_space<vmem>>, %arg10: memref<2x10x128xf32, #tpu.memory_space<vmem>>) attributes {dimension_semantics = [#tpu.dimension_semantics<parallel>], iteration_bounds = array<i64: 1>, scalar_prefetch = 0 : i64, scratch_operands = 0 : i64, tpu.core_type = #tpu.core_type<tc>, window_params = [{transform_indices = @transform_0, window_bounds = array<i64: 2, 8, 64>}, {pipeline_mode = #tpu.pipeline_mode<synchronous>, transform_indices = @transform_1, window_bounds = array<i64: 1, 64>}, {pipeline_mode = #tpu.pipeline_mode<synchronous>, transform_indices = @transform_2, window_bounds = array<i64: 1, 64>}, {pipeline_mode = #tpu.pipeline_mode<synchronous>, transform_indices = @transform_3, window_bounds = array<i64: 8, 64>}, {pipeline_mode = #tpu.pipeline_mode<synchronous>, transform_indices = @transform_4, window_bounds = array<i64: 64, 128>}, {pipeline_mode = #tpu.pipeline_mode<synchronous>, transform_indices = @transform_5, window_bounds = array<i64: 1, 128>}, {pipeline_mode = #tpu.pipeline_mode<synchronous>, transform_indices = @transform_6, window_bounds = array<i64: 128, 128>}, {pipeline_mode = #tpu.pipeline_mode<synchronous>, transform_indices = @transform_7, window_bounds = array<i64: 1, 128>}, {pipeline_mode = #tpu.pipeline_mode<synchronous>, transform_indices = @transform_8, window_bounds = array<i64: 2, 128>}, {transform_indices = @transform_9, window_bounds = array<i64: 2, 10, 128>}]} {
    %c0 = arith.constant 0 : index
    %c0_0 = arith.constant 0 : index
    %c0_1 = arith.constant 0 : index
    %0 = vector.load %arg1[%c0, %c0_0, %c0_1] : memref<2x8x64xf32, #tpu.memory_space<vmem>>, vector<2x8x64xf32>
    %cst = arith.constant dense<0.000000e+00> : vector<2x8xf32>
    %1 = vector.multi_reduction <add>, %0, %cst [2] : vector<2x8x64xf32> to vector<2x8xf32>
    %2 = vector.shape_cast %1 : vector<2x8xf32> to vector<2x8x1xf32>
    %cst_2 = arith.constant 1.562500e-02 : f32
    %3 = vector.broadcast %cst_2 : f32 to vector<2x8x1xf32>
    %4 = arith.mulf %2, %3 : vector<2x8x1xf32>
    %5 = arith.mulf %0, %0 : vector<2x8x64xf32>
    %cst_3 = arith.constant dense<0.000000e+00> : vector<2x8xf32>
    %6 = vector.multi_reduction <add>, %5, %cst_3 [2] : vector<2x8x64xf32> to vector<2x8xf32>
    %7 = vector.shape_cast %6 : vector<2x8xf32> to vector<2x8x1xf32>
    %cst_4 = arith.constant 1.562500e-02 : f32
    %8 = vector.broadcast %cst_4 : f32 to vector<2x8x1xf32>
    %9 = arith.mulf %7, %8 : vector<2x8x1xf32>
    %10 = arith.mulf %4, %4 : vector<2x8x1xf32>
    %11 = arith.subf %9, %10 : vector<2x8x1xf32>
    %12 = vector.broadcast %4 : vector<2x8x1xf32> to vector<2x8x64xf32>
    %13 = arith.subf %0, %12 : vector<2x8x64xf32>
    %cst_5 = arith.constant 9.99999974E-6 : f32
    %14 = vector.broadcast %cst_5 : f32 to vector<2x8x1xf32>
    %15 = arith.addf %11, %14 : vector<2x8x1xf32>
    %16 = math.rsqrt %15 : vector<2x8x1xf32>
    %17 = vector.broadcast %16 : vector<2x8x1xf32> to vector<2x8x64xf32>
    %18 = arith.mulf %13, %17 : vector<2x8x64xf32>
    %c0_6 = arith.constant 0 : index
    %c0_7 = arith.constant 0 : index
    %19 = vector.load %arg2[%c0_6, %c0_7] : memref<1x64xf32, #tpu.memory_space<vmem>>, vector<1x64xf32>
    %20 = vector.shape_cast %19 : vector<1x64xf32> to vector<1x1x64xf32>
    %21 = vector.broadcast %20 : vector<1x1x64xf32> to vector<2x8x64xf32>
    %22 = arith.mulf %18, %21 : vector<2x8x64xf32>
    %c0_8 = arith.constant 0 : index
    %c0_9 = arith.constant 0 : index
    %23 = vector.load %arg3[%c0_8, %c0_9] : memref<1x64xf32, #tpu.memory_space<vmem>>, vector<1x64xf32>
    %24 = vector.shape_cast %23 : vector<1x64xf32> to vector<1x1x64xf32>
    %25 = vector.broadcast %24 : vector<1x1x64xf32> to vector<2x8x64xf32>
    %26 = arith.addf %22, %25 : vector<2x8x64xf32>
    %c0_10 = arith.constant 0 : index
    %c0_11 = arith.constant 0 : index
    %27 = vector.load %arg4[%c0_10, %c0_11] : memref<8x64xf32, #tpu.memory_space<vmem>>, vector<8x64xf32>
    %28 = vector.shape_cast %27 : vector<8x64xf32> to vector<1x8x64xf32>
    %29 = vector.broadcast %28 : vector<1x8x64xf32> to vector<2x8x64xf32>
    %30 = arith.addf %26, %29 : vector<2x8x64xf32>
    %31 = vector.shape_cast %30 : vector<2x8x64xf32> to vector<16x64xf32>
    %32 = arith.truncf %31 : vector<16x64xf32> to vector<16x64xbf16>
    %c0_12 = arith.constant 0 : index
    %c0_13 = arith.constant 0 : index
    %33 = vector.load %arg5[%c0_12, %c0_13] : memref<64x128xbf16, #tpu.memory_space<vmem>>, vector<64x128xbf16>
    %cst_14 = arith.constant dense<0.000000e+00> : vector<16x128xf32>
    %34 = tpu.matmul %32, %33, %cst_14 {dimension_numbers = #tpu.dot_dimension_numbers<[1], [0], [0], [1], [0, 0, 1, 1], [], []>} : vector<16x64xbf16>, vector<64x128xbf16>, vector<16x128xf32> -> vector<16x128xf32>
    %c0_15 = arith.constant 0 : index
    %c0_16 = arith.constant 0 : index
    %35 = vector.load %arg6[%c0_15, %c0_16] : memref<1x128xf32, #tpu.memory_space<vmem>>, vector<1x128xf32>
    %36 = vector.broadcast %35 : vector<1x128xf32> to vector<16x128xf32>
    %37 = arith.addf %34, %36 : vector<16x128xf32>
    %cst_17 = arith.constant 5.000000e-01 : f32
    %38 = vector.broadcast %cst_17 : f32 to vector<16x128xf32>
    %39 = arith.mulf %38, %37 : vector<16x128xf32>
    %cst_18 = arith.constant 0.707106769 : f32
    %40 = vector.broadcast %cst_18 : f32 to vector<16x128xf32>
    %41 = arith.mulf %37, %40 : vector<16x128xf32>
    %42 = math.erf %41 : vector<16x128xf32>
    %cst_19 = arith.constant 1.000000e+00 : f32
    %43 = vector.broadcast %cst_19 : f32 to vector<16x128xf32>
    %44 = arith.addf %43, %42 : vector<16x128xf32>
    %45 = arith.mulf %39, %44 : vector<16x128xf32>
    %46 = arith.truncf %45 : vector<16x128xf32> to vector<16x128xbf16>
    %c0_20 = arith.constant 0 : index
    %c0_21 = arith.constant 0 : index
    %47 = vector.load %arg7[%c0_20, %c0_21] : memref<128x128xbf16, #tpu.memory_space<vmem>>, vector<128x128xbf16>
    %cst_22 = arith.constant dense<0.000000e+00> : vector<16x128xf32>
    %48 = tpu.matmul %46, %47, %cst_22 {dimension_numbers = #tpu.dot_dimension_numbers<[1], [0], [0], [1], [0, 0, 1, 1], [], []>} : vector<16x128xbf16>, vector<128x128xbf16>, vector<16x128xf32> -> vector<16x128xf32>
    %c0_23 = arith.constant 0 : index
    %c0_24 = arith.constant 0 : index
    %49 = vector.load %arg8[%c0_23, %c0_24] : memref<1x128xf32, #tpu.memory_space<vmem>>, vector<1x128xf32>
    %50 = vector.broadcast %49 : vector<1x128xf32> to vector<16x128xf32>
    %51 = arith.addf %48, %50 : vector<16x128xf32>
    %52 = vector.shape_cast %51 : vector<16x128xf32> to vector<2x8x128xf32>
    %c0_25 = arith.constant 0 : index
    %c0_26 = arith.constant 0 : index
    %53 = vector.load %arg9[%c0_25, %c0_26] : memref<2x128xf32, #tpu.memory_space<vmem>>, vector<2x128xf32>
    %54 = vector.shape_cast %53 : vector<2x128xf32> to vector<1x2x128xf32>
    %55 = vector.extract_strided_slice %54 {offsets = [0, 0, 0], sizes = [1, 1, 128], strides = [1, 1, 1]} : vector<1x2x128xf32> to vector<1x1x128xf32>
    %56 = vector.shape_cast %55 : vector<1x1x128xf32> to vector<1x1x128xf32>
    %57 = vector.broadcast %56 : vector<1x1x128xf32> to vector<2x1x128xf32>
    %58 = vector.extract_strided_slice %54 {offsets = [0, 1, 0], sizes = [1, 1, 128], strides = [1, 1, 1]} : vector<1x2x128xf32> to vector<1x1x128xf32>
    %59 = vector.shape_cast %58 : vector<1x1x128xf32> to vector<1x1x128xf32>
    %60 = vector.broadcast %59 : vector<1x1x128xf32> to vector<2x1x128xf32>
    %61 = tpu.concatenate %57, %52, %60 in 1 : vector<2x1x128xf32>, vector<2x8x128xf32>, vector<2x1x128xf32> -> vector<2x10x128xf32>
    %c0_27 = arith.constant 0 : index
    %c0_28 = arith.constant 0 : index
    %c0_29 = arith.constant 0 : index
    %62 = vector.load %arg10[%c0_27, %c0_28, %c0_29] : memref<2x10x128xf32, #tpu.memory_space<vmem>>, vector<2x10x128xf32>
    tpu.vector_store %arg10[%c0_27, %c0_28, %c0_29], %61 {strides = array<i32>} : memref<2x10x128xf32, #tpu.memory_space<vmem>>, vector<2x10x128xf32>,
    return
  }
  func.func @transform_0(%arg0: i32) -> (i32, i32, i32) {
    %c0_i32 = arith.constant 0 : i32
    %c0_i32_0 = arith.constant 0 : i32
    %c0_i32_1 = arith.constant 0 : i32
    return %arg0, %c0_i32, %c0_i32_0 : i32, i32, i32
  }
  func.func @transform_1(%arg0: i32) -> (i32, i32) {
    %c0_i32 = arith.constant 0 : i32
    %c0_i32_0 = arith.constant 0 : i32
    %c0_i32_1 = arith.constant 0 : i32
    return %c0_i32, %c0_i32_0 : i32, i32
  }
  func.func @transform_2(%arg0: i32) -> (i32, i32) {
    %c0_i32 = arith.constant 0 : i32
    %c0_i32_0 = arith.constant 0 : i32
    %c0_i32_1 = arith.constant 0 : i32
    return %c0_i32, %c0_i32_0 : i32, i32
  }
  func.func @transform_3(%arg0: i32) -> (i32, i32) {
    %c0_i32 = arith.constant 0 : i32
    %c0_i32_0 = arith.constant 0 : i32
    %c0_i32_1 = arith.constant 0 : i32
    return %c0_i32, %c0_i32_0 : i32, i32
  }
  func.func @transform_4(%arg0: i32) -> (i32, i32) {
    %c0_i32 = arith.constant 0 : i32
    %c0_i32_0 = arith.constant 0 : i32
    %c0_i32_1 = arith.constant 0 : i32
    return %c0_i32, %c0_i32_0 : i32, i32
  }
  func.func @transform_5(%arg0: i32) -> (i32, i32) {
    %c0_i32 = arith.constant 0 : i32
    %c0_i32_0 = arith.constant 0 : i32
    %c0_i32_1 = arith.constant 0 : i32
    return %c0_i32, %c0_i32_0 : i32, i32
  }
  func.func @transform_6(%arg0: i32) -> (i32, i32) {
    %c0_i32 = arith.constant 0 : i32
    %c0_i32_0 = arith.constant 0 : i32
    %c0_i32_1 = arith.constant 0 : i32
    return %c0_i32, %c0_i32_0 : i32, i32
  }
  func.func @transform_7(%arg0: i32) -> (i32, i32) {
    %c0_i32 = arith.constant 0 : i32
    %c0_i32_0 = arith.constant 0 : i32
    %c0_i32_1 = arith.constant 0 : i32
    return %c0_i32, %c0_i32_0 : i32, i32
  }
  func.func @transform_8(%arg0: i32) -> (i32, i32) {
    %c0_i32 = arith.constant 0 : i32
    %c0_i32_0 = arith.constant 0 : i32
    %c0_i32_1 = arith.constant 0 : i32
    return %c0_i32, %c0_i32_0 : i32, i32
  }
  func.func @transform_9(%arg0: i32) -> (i32, i32, i32) {
    %c0_i32 = arith.constant 0 : i32
    %c0_i32_0 = arith.constant 0 : i32
    %c0_i32_1 = arith.constant 0 : i32
    return %arg0, %c0_i32, %c0_i32_0 : i32, i32, i32
  }
}

</mosaic_0001>

<bundles_post_ra>
// kernel: tpu_custom_call.1
= control target key start
LH: loop header
LB: loop body
LE: loop exit
PB: predicated region body
PF: predicated region fallthrough
CT: control target
= control target key end

     0   :  { %14 = vsyncpa [#allocation3], 0  ;;  %s706_s0 = inlined_call_operand.hbm [shape: f32[2,8,64], index: 0, kind: input, shape index: {}]   ;;  %s707_s1 = inlined_call_operand.vmem [shape: f32[1,64], index: 1, kind: input, shape index: {}]   ;;  %s708_s2 = inlined_call_operand.hbm [shape: f32[1,64], index: 2, kind: input, shape index: {}]   ;;  %s709_s3 = inlined_call_operand.hbm [shape: f32[8,64], index: 3, kind: input, shape index: {}]   ;;  %s710_s4 = inlined_call_operand.hbm [shape: bf16[64,128], index: 4, kind: input, shape index: {}]   ;;  %s711_s5 = inlined_call_operand.vmem [shape: f32[1,128], index: 5, kind: input, shape index: {}]   ;;  %s712_s6 = inlined_call_operand.hbm [shape: bf16[128,128], index: 6, kind: input, shape index: {}]   ;;  %s713_s7 = inlined_call_operand.vmem [shape: f32[1,128], index: 7, kind: input, shape index: {}]   ;;  %s714_s8 = inlined_call_operand.vmem [shape: f32[2,128], index: 8, kind: input, shape index: {}]   ;;  %s715_s9 = inlined_call_operand.vmem [shape: f32[2,10,128], index: 9, kind: output, shape index: {}]  }
   0x1   :  { %15 = vsyncpa [#allocation5], 0 }
   0x2   :  { %16 = vsyncpa [#allocation8], 0  ;;  %s581_s30 = smov [#allocation4]   ;;  %s582_s11 = smov [#allocation7]  }
   0x3   :  { %s37_s10 = sshll.u32 %s581_s30, 4  ;;  %s56_s12 = sshll.u32 %s582_s11, 4  ;;  %s38_s10 = int_to_ptr.vmem [resolvable:$true] %s37_s10  ;;  %s57_s12 = int_to_ptr.vmem [resolvable:$true] %s56_s12 }
   0x4   :  { %s483_s13 = scalar_lea.vmem %s38_s10, 16  ;;  %s487_s14 = scalar_lea.vmem %s38_s10, 32 }
   0x5   :  { %p484_p0 = scmp.ne.s32.totalorder %s38_s10, %s483_s13  ;;  %p488_p1 = scmp.lt.s32.totalorder %s38_s10, %s38_s10 }
   0x6   :  { %p489_p2 = scmp.lt.s32.totalorder %s487_s14, %s483_s13 }
   0x8   :  { %p490_p3 = por %p489_p2, %p488_p1 }
   0xa   :  { %p491_p4 = pnand %p490_p3, %p484_p0 }
   0xc   :  { %494 = shalt.err (!%p491_p4)
}
   0xd   :  { %40 = dma.hbm_to_vmem [thread:$0]  %s708_s2, 16, %s38_s10, [#allocation5]  }
   0xe   :  { %s503_s17 = scalar_lea.vmem %s57_s12, 512  ;;  %p508_p6 = scmp.lt.s32.totalorder %s57_s12, %s57_s12 }
   0xf   :  { %p504_p5 = scmp.ne.s32.totalorder %s57_s12, %s503_s17  ;;  %p509_p7 = scmp.lt.s32.totalorder %s503_s17, %s503_s17 }
  0x11   :  { %p510_p8 = por %p509_p7, %p508_p6 }
  0x13   :  { %p511_p9 = pnand %p510_p8, %p504_p5 }
  0x15   :  { %514 = shalt.err (!%p511_p9)
}
  0x16   :  { %s583_s18 = smov 64   ;;  %s584_s19 = smov 4  }
  0x17   :  { %62 = dma.hbm_to_vmem [thread:$0]  %s710_s4, 512, %s57_s12, [#allocation8], %s583_s18, %s583_s18, %s584_s19  }
  0x18   :  { %s585_s22 = smov [#allocation2]  }
  0x19   :  { %s22_s23 = sshll.u32 %s585_s22, 4  ;;  %s23_s23 = int_to_ptr.vmem [resolvable:$true] %s22_s23 }
  0x1a   :  { %s523_s2 = scalar_lea.vmem %s23_s23, 256  ;;  %p528_p11 = scmp.lt.s32.totalorder %s23_s23, %s23_s23 }
  0x1b   :  { %p524_p10 = scmp.ne.s32.totalorder %s23_s23, %s523_s2  ;;  %p529_p12 = scmp.lt.s32.totalorder %s523_s2, %s523_s2 }
  0x1d   :  { %p530_p13 = por %p529_p12, %p528_p11 }
  0x1f   :  { %p531_p0 = pnand %p530_p13, %p524_p10 }
  0x21   :  { %534 = shalt.err (!%p531_p0)
}
  0x22   :  { %s586_s24 = smov 128   ;;  %s587_s25 = smov 8  }
  0x23   :  { %28 = dma.hbm_to_vmem [thread:$0]  %s706_s0, 256, %s23_s23, [#allocation3], %s586_s24, %s586_s24, %s587_s25  }
  0x24   :  { %s588_s28 = smov [#allocation6]   ;;  %s589_s4 = smov [#allocation9]  }
  0x25   :  { %s47_s29 = sshll.u32 %s588_s28, 4  ;;  %s70_s30 = sshll.u32 %s589_s4, 4  ;;  %s48_s29 = int_to_ptr.vmem [resolvable:$true] %s47_s29  ;;  %s71_s30 = int_to_ptr.vmem [resolvable:$true] %s70_s30 }
  0x26   :  { %s543_s10 = scalar_lea.vmem %s48_s29, 128  ;;  %p548_p2 = scmp.lt.s32.totalorder %s48_s29, %s48_s29 }
  0x27   :  { %p544_p1 = scmp.ne.s32.totalorder %s48_s29, %s543_s10  ;;  %p549_p3 = scmp.lt.s32.totalorder %s543_s10, %s543_s10 }
  0x29   :  { %p550_p4 = por %p549_p3, %p548_p2 }
  0x2b   :  { %p551_p5 = pnand %p550_p4, %p544_p1 }
  0x2d   :  { %554 = shalt.err (!%p551_p5)
}
  0x2e   :  { %50 = dma.hbm_to_vmem [thread:$0]  %s709_s3, 128, %s48_s29, [#allocation5]  }
  0x2f   :  { %s563_s13 = scalar_lea.vmem %s71_s30, 1024  ;;  %p568_p7 = scmp.lt.s32.totalorder %s71_s30, %s71_s30 }
  0x30   :  { %p564_p6 = scmp.ne.s32.totalorder %s71_s30, %s563_s13  ;;  %p569_p8 = scmp.lt.s32.totalorder %s563_s13, %s563_s13 }
  0x32   :  { %p570_p9 = por %p569_p8, %p568_p7 }
  0x34   :  { %p571_p10 = pnand %p570_p9, %p564_p6 }
  0x36   :  { %574 = shalt.err (!%p571_p10)
}
  0x37   :  { %76 = dma.hbm_to_vmem [thread:$0]  %s712_s6, 1024, %s71_s30, [#allocation8], %s583_s18, %s583_s18, %s584_s19  }
  0x38   :  { %575 = dma.done.wait [#allocation3], 256  }
  0x39   :  { %576 = vsyncadd [#allocation3], 4294967040 }
  0x3a   :  { %577 = dma.done.wait [#allocation5], 144  }
  0x3b   :  { %578 = vsyncadd [#allocation5], 4294967152 }
  0x3c   :  { %579 = dma.done.wait [#allocation8], 1536  }
  0x3d   :  { %580 = vsyncadd [#allocation8], 4294965760  ;;  %vm99_vm0 = vcmask 523264   ;;  %v97_v0 = vld [vmem:[#allocation2] sm:$0xff]  ;;  %v98_v1 = vld [vmem:[#allocation2 + $0x8] sm:$0xff]  ;;  %v590_v9 = vmov 0.0  }
  0x3e   :  { %v100_v2 = vsel %vm99_vm0, %v97_v0, 0.0  ;;  %v108_v3 = vmul.f32 %v97_v0, %v97_v0  ;;  %v103_v4 = vsel %vm99_vm0, %v98_v1, 0.0  ;;  %v109_v5 = vmul.f32 %v98_v1, %v98_v1  ;;  %v455_v8 = vld [vmem:[#allocation7 + $0x18] sm:$0xff]   ;;  %412 = vmatprep.subr.bf16.mxu0 %v590_v9  ;;  %v456_v10 = vld [vmem:[#allocation7 + $0x10] sm:$0xff]   ;;  %424 = vmatprep.subr.bf16.mxu1 %v590_v9  ;;  %v457_v11 = vld [vmem:[#allocation7 + $0x8] sm:$0xff]  }
  0x3f   :  { %101 = vadd.xlane.f32.xlu0 %v100_v2  ;;  %vm591_vm1 = vmmov 0   ;;  %413 = vmatpush3.bf16.msra.mxu0 %v455_v8  ;;  %v458_v12 = vld [vmem:[#allocation7] sm:$0xff]   ;;  %v459_v13 = vld [vmem:[#allocation9 + $0x38] sm:$0xff]   ;;  %v382_v35 = vld [vmem:[#allocation4] ss:$0 sm:$0xff]  ;;  %vm365_vm2 = vcmask 1040384  }
  0x40   :  { %v110_v6 = vsel %vm99_vm0, %v108_v3, 0.0  ;;  %v113_v7 = vsel %vm99_vm0, %v109_v5, 0.0  ;;  %420 = vmatprep.mubr.msk.bf16.mxu0 %vm591_vm1, %v590_v9  ;;  %414 = vmatprep.subr.bf16.mxu0 %v590_v9  ;;  %v381_v30 = vld [vmem:[%s707_s1] ss:$0 sm:$0xff]  ;;  %v148_v39 = vld [vmem:[#allocation6] sm:$0xff]  ;;  %v460_v44 = vld [vmem:[#allocation9 + $0x30] sm:$0xff]  }
  0x41   :  { %111 = vadd.xlane.f32.xlu1 %v110_v6  ;;  %440 = vmatprep.mubr.msk.bf16.mxu1 %vm591_vm1, %v590_v9  ;;  %v461_v45 = vld [vmem:[#allocation9 + $0x28] sm:$0xff]   ;;  %v462_v46 = vld [vmem:[#allocation9 + $0x20] sm:$0xff]   ;;  %v463_v47 = vld [vmem:[#allocation9 + $0x18] sm:$0xff]  }
  0x42   :  { %425 = vmatpush3.bf16.msra.mxu1 %v459_v13  ;;  %v464_v48 = vld [vmem:[#allocation9 + $0x10] sm:$0xff]   ;;  %v465_v49 = vld [vmem:[#allocation9 + $0x8] sm:$0xff]   ;;  %v466_v50 = vld [vmem:[#allocation9] sm:$0xff]  }
  0x43   :  { %104 = vadd.xlane.f32.xlu0 %v103_v4  ;;  %415 = vmatpush3.bf16.msra.mxu0 %v456_v10  ;;  %v383_v51 = vld [vmem:[%s711_s5] ss:$0 sm:$0xff] }
  0x44   :  { %416 = vmatprep.subr.bf16.mxu0 %v590_v9  ;;  %426 = vmatprep.subr.bf16.mxu1 %v590_v9  ;;  %v389_v5 = vld [vmem:[%s713_s7] ss:$0 sm:$0xff] }
  0x45   :  { %114 = vadd.xlane.f32.xlu1 %v113_v7  ;;  %v358_v8 = vld [vmem:[%s714_s8] sm:$0x3] }
  0x46   :  { %427 = vmatpush3.bf16.msra.mxu1 %v460_v44 }
  0x47   :  { %417 = vmatpush3.bf16.msra.mxu0 %v457_v11  ;;  %428 = vmatprep.subr.bf16.mxu1 %v590_v9 }
  0x48   :  { %418 = vmatprep.subr.bf16.mxu0 %v590_v9 }
  0x4a   :  { %429 = vmatpush3.bf16.msra.mxu1 %v461_v45 }
  0x4b   :  { %419 = vmatpush3.bf16.msra.mxu0 %v458_v12  ;;  %430 = vmatprep.subr.bf16.mxu1 %v590_v9 }
  0x4e   :  { %431 = vmatpush3.bf16.msra.mxu1 %v462_v46 }
  0x4f   :  { %432 = vmatprep.subr.bf16.mxu1 %v590_v9 }
  0x52   :  { %433 = vmatpush3.bf16.msra.mxu1 %v463_v47 }
  0x53   :  { %434 = vmatprep.subr.bf16.mxu1 %v590_v9 }
  0x56   :  { %435 = vmatpush3.bf16.msra.mxu1 %v464_v48 }
  0x57   :  { %436 = vmatprep.subr.bf16.mxu1 %v590_v9 }
  0x5a   :  { %437 = vmatpush3.bf16.msra.mxu1 %v465_v49 }
  0x5b   :  { %438 = vmatprep.subr.bf16.mxu1 %v590_v9 }
  0x5e   :  { %439 = vmatpush3.bf16.msra.mxu1 %v466_v50 }
  0xc8   :  { %v102_v14 = vpop.xlane.xlu0 %101 }
  0xc9   :  { %v106_v15 = vmul.f32 0.015625, %v102_v14 }
  0xca   :  { %v112_v16 = vpop.xlane.xlu1 %111 }
  0xcb   :  { %v118_v17 = vmul.f32 %v106_v15, %v106_v15  ;;  %v116_v18 = vmul.f32 0.015625, %v112_v16  ;;  %v122_v28 = vsub.f32 %v97_v0, %v106_v15 }
  0xcc   :  { %v105_v19 = vpop.xlane.xlu0 %104 }
  0xcd   :  { %v120_v20 = vsub.f32 %v116_v18, %v118_v17  ;;  %v107_v21 = vmul.f32 0.015625, %v105_v19 }
  0xce   :  { %v115_v22 = vpop.xlane.xlu1 %114 }
  0xcf   :  { %v124_v23 = vadd.f32 1e-05, %v120_v20  ;;  %v119_v24 = vmul.f32 %v107_v21, %v107_v21  ;;  %v117_v25 = vmul.f32 0.015625, %v115_v22  ;;  %v123_v32 = vsub.f32 %v98_v1, %v107_v21 }
  0xd1   :  { %467 = vrsqrt.f32 %v124_v23  ;;  %v121_v26 = vsub.f32 %v117_v25, %v119_v24 }
  0xd3   :  { %v125_v27 = vadd.f32 1e-05, %v121_v26 }
  0xd5   :  { %469 = vrsqrt.f32 %v125_v27 }
  0xde   :  { %v468_v29 = vpop.eup %467 }
  0xdf   :  { %v128_v31 = vmul.f32 %v468_v29, %v122_v28 }
  0xe1   :  { %v137_v33 = vmul.f32 %v381_v30, %v128_v31 }
  0xe2   :  { %v470_v34 = vpop.eup %469 }
  0xe3   :  { %v129_v36 = vmul.f32 %v470_v34, %v123_v32  ;;  %v146_v38 = vadd.f32 %v382_v35, %v137_v33 }
  0xe5   :  { %v138_v37 = vmul.f32 %v381_v30, %v129_v36  ;;  %v149_v41 = vadd.f32 %v148_v39, %v146_v38 }
  0xe7   :  { %v147_v40 = vadd.f32 %v382_v35, %v138_v37 }
  0xe9   :  { %v150_v42 = vadd.f32 %v148_v39, %v147_v40 }
  0xeb   :  { %v151_v43 = vpack.c.bf16 %v150_v42, %v149_v41 }
  0xed   :  { %421 = vmatmul.mubr.msk.bf16.vlgmr.msra.gmra.mxu0 %vm99_vm0, %v151_v43 }
 0x1ad   :  { %v228_v52 = vpop.f32.mrf.mxu0 }
 0x1ae   :  { %v229_v53 = vadd.f32 %v383_v51, %v228_v52 }
 0x1af   :  { %v422_v54 = vpop.f32.mrf.mxu0 }
 0x1b0   :  { %v237_v55 = vmul.f32 0.70710677, %v229_v53  ;;  %v235_v63 = vmul.f32 0.5, %v229_v53 }
 0x1b1   :  { %v231_v56 = vpop.f32.mrf.mxu0 }
 0x1b2   :  { %471 = verf.f32 %v237_v55  ;;  %v232_v57 = vadd.f32 %v383_v51, %v231_v56 }
 0x1b3   :  { %v423_v58 = vpop.f32.mrf.mxu0 }
 0x1b4   :  { %v238_v59 = vmul.f32 0.70710677, %v232_v57  ;;  %v236_v0 = vmul.f32 0.5, %v232_v57 }
 0x1b6   :  { %473 = verf.f32 %v238_v59 }
 0x1bf   :  { %v472_v60 = vpop.eup %471 }
 0x1c0   :  { %v241_v61 = vadd.f32 1.0, %v472_v60 }
 0x1c2   :  { %v243_v2 = vmul.f32 %v241_v61, %v235_v63 }
 0x1c3   :  { %v474_v62 = vpop.eup %473 }
 0x1c4   :  { %v242_v1 = vadd.f32 1.0, %v474_v62 }
 0x1c6   :  { %v244_v3 = vmul.f32 %v242_v1, %v236_v0 }
 0x1c8   :  { %v245_v4 = vpack.c.bf16 %v244_v3, %v243_v2 }
 0x1ca   :  { %441 = vmatmul.mubr.bf16.vlgmr.msra.gmra.mxu1 %v245_v4 }
 0x28a   :  { %v351_v6 = vpop.f32.mrf.mxu1 }
 0x28b   :  { %v352_v7 = vadd.f32 %v389_v5, %v351_v6 }
 0x28c   :  { %v442_v9 = vpop.f32.mrf.mxu1 }
 0x28d   :  { %v361_v10 = vrot.slane %v352_v7, 7 }
 0x28e   :  { %v354_v11 = vpop.f32.mrf.mxu1 }
 0x28f   :  { %v366_v12 = vsel %vm365_vm2, %v358_v8, %v361_v10  ;;  %v368_v13 = vsel %vm365_vm2, %v361_v10, %v358_v8  ;;  %v355_v14 = vadd.f32 %v389_v5, %v354_v11 }
 0x290   :  { %370 = vst [vmem:[%s715_s9] sm:$0xff] %v366_v12  ;;  %371 = vst [vmem:[%s715_s9 + $0x8] sm:$0x3] %v368_v13  ;;  %v443_v15 = vpop.f32.mrf.mxu1 }
 0x291   :  { %v362_v16 = vrot.slane %v355_v14, 7 }
 0x293   :  { %v367_v17 = vsel %vm365_vm2, %v358_v8, %v362_v16  ;;  %v369_v18 = vsel %vm365_vm2, %v362_v16, %v358_v8 }
 0x294   :  { %372 = vst [vmem:[%s715_s9 + $0x10] sm:$0xff] %v367_v17  ;;  %373 = vst [vmem:[%s715_s9 + $0x18] sm:$0x3] %v369_v18 }
 0x295   :  { %378 = vsyncpa [#allocation3], 1 }
 0x296   :  { %379 = vsyncpa [#allocation5], 1 }
 0x297   :  { %380 = vsyncpa [#allocation8], 1 }

</bundles_post_ra>
